<compile_context>
chip_gen: v6e
topology: v6e:2x2x1
jax: 0.10.0
libtpu: 0.0.40
codegen_flags: <defaults>
</compile_context>

<pallas_src>
import math

import jax
import jax.numpy as jnp
from jax.experimental import pallas as pl
from jax.experimental.pallas import tpu as pltpu


def _round_up(x: int, m: int) -> int:
    return ((x + m - 1) // m) * m


def _make_mlp_kernel(row_layout):
    """row_layout: static tuple of (w_row_off, w_rows, b_row_off, apply_tanh)."""

    def kernel(x_ref, p_ref, out_ref):
        h = x_ref[...].astype(jnp.float32)          # (tm, d0)
        for w_off, w_rows, b_off, act in row_layout:
            w = p_ref[w_off:w_off + w_rows, :]      # static, 8/128-aligned slice
            b = p_ref[b_off:b_off + 1, :]           # (1, C) -> lane broadcast
            h = jnp.dot(h, w, preferred_element_type=jnp.float32) + b
            if act:
                h = jnp.tanh(h)
        # Final h is (tm, C) with C a multiple of 128 -> unmasked, lane-dense store.
        out_ref[...] = h.astype(out_ref.dtype)

    return kernel


def pack_params(params, in_features, hidden_features, out_features):
    """Pack all weights/biases into one zero-padded f32 slab.

    Every weight is widened to C (>=128) lanes, the input weight's fan-in is
    padded to a multiple of 8, and each bias gets its own 8-row block, so all
    in-kernel slices are sublane/lane aligned and every matmul runs full-width
    on the MXU.  Zero padding keeps the math exact.
    """
    (w_in, b_in), hidden, (w_out, b_out) = params
    d0 = _round_up(in_features, 8)
    C = max(128, _round_up(hidden_features, 128), _round_up(out_features, 128))

    blocks = []
    row_layout = []
    row = 0

    def add_layer(w, b, rows, act):
        nonlocal row
        fan_in, fan_out = w.shape
        w_slab = jnp.zeros((rows, C), jnp.float32).at[:fan_in, :fan_out].set(w)
        b_slab = jnp.zeros((8, C), jnp.float32).at[0, :fan_out].set(b.reshape(-1))
        blocks.append(w_slab)
        blocks.append(b_slab)
        row_layout.append((row, rows, row + rows, act))
        row += rows + 8

    add_layer(w_in, b_in, d0, True)            # linear_in  (+ tanh)
    for w, b in hidden:                        # hidden layers (+ tanh)
        add_layer(w, b, C, True)
    add_layer(w_out, b_out, C, False)          # linear_out (no activation)

    packed = jnp.concatenate(blocks, axis=0)   # (R, C), R multiple of 8
    return packed, tuple(row_layout), d0, C


def mlp_forward(x, packed, row_layout, d0, C, out_features, *, tm: int = 512):
    """Run the fused MLP forward via a single pallas_call, tiled over batch."""
    N, in_features = x.shape

    # Batch tiling: clamp tile to the (padded) batch, pad the batch to a
    # multiple of the tile instead of asserting.
    tm_eff = min(tm, _round_up(N, 8))
    n_pad = _round_up(N, tm_eff)
    x_pad = jnp.pad(x.astype(jnp.float32),
                    ((0, n_pad - N), (0, d0 - in_features)))

    kernel = _make_mlp_kernel(row_layout)
    num_layers = len(row_layout)

    flops = 2 * n_pad * (d0 * C + (num_layers - 1) * C * C)
    transcendentals = n_pad * (num_layers - 1) * C
    bytes_accessed = 4 * (n_pad * (d0 + C) + int(packed.size))

    out = pl.pallas_call(
        kernel,
        out_shape=jax.ShapeDtypeStruct((n_pad, C), jnp.float32),
        grid_spec=pltpu.PrefetchScalarGridSpec(
            num_scalar_prefetch=0,
            grid=(n_pad // tm_eff,),
            in_specs=[
                pl.BlockSpec((tm_eff, d0), lambda i: (i, 0)),   # x tile
                pl.BlockSpec(packed.shape, lambda i: (0, 0)),   # packed params
            ],
            out_specs=pl.BlockSpec((tm_eff, C), lambda i: (i, 0)),
        ),
        compiler_params=pltpu.CompilerParams(
            dimension_semantics=("parallel",),
        ),
        cost_estimate=pl.CostEstimate(
            flops=flops,
            transcendentals=transcendentals,
            bytes_accessed=bytes_accessed,
        ),
    )(x_pad, packed)

    return out[:N, :out_features]


def init_params(key, in_features, out_features, hidden_features,
                num_hidden_layers):
    """Deterministic synthetic parameters matching nn.Linear init, stored as
    (fan_in, fan_out) so every layer is a plain `x @ W + b`."""
    keys = jax.random.split(key, 2 * (num_hidden_layers + 2))
    it = iter(keys)

    def lin(fan_in, fan_out):
        bound = 1.0 / math.sqrt(fan_in)
        w = jax.random.uniform(next(it), (fan_in, fan_out), jnp.float32,
                               -bound, bound)
        b = jax.random.uniform(next(it), (fan_out,), jnp.float32,
                               -bound, bound)
        return w, b

    w_in = lin(in_features, hidden_features)                      # linear_in
    hidden = [lin(hidden_features, hidden_features)
              for _ in range(num_hidden_layers)]                  # hidden layers
    w_out = lin(hidden_features, out_features)                    # linear_out
    return w_in, hidden, w_out


def mlp_reference(x, params):
    """Plain-JAX reference mirroring the PyTorch forward exactly."""
    (w_in, b_in), hidden, (w_out, b_out) = params
    h = jnp.tanh(x @ w_in + b_in)
    for w, b in hidden:
        h = jnp.tanh(h @ w + b)
    return h @ w_out + b_out


if __name__ == "__main__":
    batch = 256
    in_features = 4
    out_features = 2
    hidden_features = 32
    num_hidden_layers = 2

    key = jax.random.PRNGKey(0)
    kx, kp = jax.random.split(key)
    x = jax.random.normal(kx, (batch, in_features), dtype=jnp.float32)
    params = init_params(kp, in_features, out_features, hidden_features,
                         num_hidden_layers)

    packed, row_layout, d0, C = pack_params(params, in_features,
                                            hidden_features, out_features)

    # tm=128 -> 2 grid steps at batch=256 (keeps both TCs busy on v7x).
    out = mlp_forward(x, packed, row_layout, d0, C, out_features, tm=128)
    out = jax.block_until_ready(out)

    ref = mlp_reference(x, params)
    assert out.shape == (batch, out_features)
    assert jnp.allclose(out, ref, atol=1e-4, rtol=1e-4), "mismatch vs reference"

    print("KERNEL_OK")
</pallas_src>

<mosaic_0001>
module attributes {stable_mosaic.version = 11 : i64} {
  func.func @kernel(%arg0: i32, %arg1: memref<128x8xf32, #tpu.memory_space<vmem>>, %arg2: memref<424x128xf32, #tpu.memory_space<vmem>>, %arg3: memref<128x128xf32, #tpu.memory_space<vmem>>) attributes {dimension_semantics = [#tpu.dimension_semantics<parallel>], iteration_bounds = array<i64: 2>, scalar_prefetch = 0 : i64, scratch_operands = 0 : i64, tpu.core_type = #tpu.core_type<tc>, window_params = [{transform_indices = @transform_0, window_bounds = array<i64: 128, 8>}, {pipeline_mode = #tpu.pipeline_mode<synchronous>, transform_indices = @transform_1, window_bounds = array<i64: 424, 128>}, {transform_indices = @transform_2, window_bounds = array<i64: 128, 128>}]} {
    %c0 = arith.constant 0 : index
    %c0_0 = arith.constant 0 : index
    %0 = vector.load %arg1[%c0, %c0_0] : memref<128x8xf32, #tpu.memory_space<vmem>>, vector<128x8xf32>
    %c0_1 = arith.constant 0 : index
    %c0_2 = arith.constant 0 : index
    %1 = vector.load %arg2[%c0_1, %c0_2] : memref<424x128xf32, #tpu.memory_space<vmem>>, vector<8x128xf32>
    %c8 = arith.constant 8 : index
    %c0_3 = arith.constant 0 : index
    %2 = vector.load %arg2[%c8, %c0_3] : memref<424x128xf32, #tpu.memory_space<vmem>>, vector<1x128xf32>
    %cst = arith.constant dense<0.000000e+00> : vector<128x128xf32>
    %3 = tpu.matmul %0, %1, %cst {dimension_numbers = #tpu.dot_dimension_numbers<[1], [0], [0], [1], [0, 0, 1, 1], [], []>} : vector<128x8xf32>, vector<8x128xf32>, vector<128x128xf32> -> vector<128x128xf32>
    %4 = vector.broadcast %2 : vector<1x128xf32> to vector<128x128xf32>
    %5 = arith.addf %3, %4 : vector<128x128xf32>
    %6 = math.tanh %5 : vector<128x128xf32>
    %c16 = arith.constant 16 : index
    %c0_4 = arith.constant 0 : index
    %7 = vector.load %arg2[%c16, %c0_4] : memref<424x128xf32, #tpu.memory_space<vmem>>, vector<128x128xf32>
    %c144 = arith.constant 144 : index
    %c0_5 = arith.constant 0 : index
    %8 = vector.load %arg2[%c144, %c0_5] : memref<424x128xf32, #tpu.memory_space<vmem>>, vector<1x128xf32>
    %cst_6 = arith.constant dense<0.000000e+00> : vector<128x128xf32>
    %9 = tpu.matmul %6, %7, %cst_6 {dimension_numbers = #tpu.dot_dimension_numbers<[1], [0], [0], [1], [0, 0, 1, 1], [], []>} : vector<128x128xf32>, vector<128x128xf32>, vector<128x128xf32> -> vector<128x128xf32>
    %10 = vector.broadcast %8 : vector<1x128xf32> to vector<128x128xf32>
    %11 = arith.addf %9, %10 : vector<128x128xf32>
    %12 = math.tanh %11 : vector<128x128xf32>
    %c152 = arith.constant 152 : index
    %c0_7 = arith.constant 0 : index
    %13 = vector.load %arg2[%c152, %c0_7] : memref<424x128xf32, #tpu.memory_space<vmem>>, vector<128x128xf32>
    %c280 = arith.constant 280 : index
    %c0_8 = arith.constant 0 : index
    %14 = vector.load %arg2[%c280, %c0_8] : memref<424x128xf32, #tpu.memory_space<vmem>>, vector<1x128xf32>
    %cst_9 = arith.constant dense<0.000000e+00> : vector<128x128xf32>
    %15 = tpu.matmul %12, %13, %cst_9 {dimension_numbers = #tpu.dot_dimension_numbers<[1], [0], [0], [1], [0, 0, 1, 1], [], []>} : vector<128x128xf32>, vector<128x128xf32>, vector<128x128xf32> -> vector<128x128xf32>
    %16 = vector.broadcast %14 : vector<1x128xf32> to vector<128x128xf32>
    %17 = arith.addf %15, %16 : vector<128x128xf32>
    %18 = math.tanh %17 : vector<128x128xf32>
    %c288 = arith.constant 288 : index
    %c0_10 = arith.constant 0 : index
    %19 = vector.load %arg2[%c288, %c0_10] : memref<424x128xf32, #tpu.memory_space<vmem>>, vector<128x128xf32>
    %c416 = arith.constant 416 : index
    %c0_11 = arith.constant 0 : index
    %20 = vector.load %arg2[%c416, %c0_11] : memref<424x128xf32, #tpu.memory_space<vmem>>, vector<1x128xf32>
    %cst_12 = arith.constant dense<0.000000e+00> : vector<128x128xf32>
    %21 = tpu.matmul %18, %19, %cst_12 {dimension_numbers = #tpu.dot_dimension_numbers<[1], [0], [0], [1], [0, 0, 1, 1], [], []>} : vector<128x128xf32>, vector<128x128xf32>, vector<128x128xf32> -> vector<128x128xf32>
    %22 = vector.broadcast %20 : vector<1x128xf32> to vector<128x128xf32>
    %23 = arith.addf %21, %22 : vector<128x128xf32>
    %c0_13 = arith.constant 0 : index
    %c0_14 = arith.constant 0 : index
    %24 = vector.load %arg3[%c0_13, %c0_14] : memref<128x128xf32, #tpu.memory_space<vmem>>, vector<128x128xf32>
    tpu.vector_store %arg3[%c0_13, %c0_14], %23 {strides = array<i32>} : memref<128x128xf32, #tpu.memory_space<vmem>>, vector<128x128xf32>,
    return
  }
  func.func @transform_0(%arg0: i32) -> (i32, i32) {
    %c0_i32 = arith.constant 0 : i32
    %c0_i32_0 = arith.constant 0 : i32
    return %arg0, %c0_i32 : i32, i32
  }
  func.func @transform_1(%arg0: i32) -> (i32, i32) {
    %c0_i32 = arith.constant 0 : i32
    %c0_i32_0 = arith.constant 0 : i32
    %c0_i32_1 = arith.constant 0 : i32
    return %c0_i32, %c0_i32_0 : i32, i32
  }
  func.func @transform_2(%arg0: i32) -> (i32, i32) {
    %c0_i32 = arith.constant 0 : i32
    %c0_i32_0 = arith.constant 0 : i32
    return %arg0, %c0_i32 : i32, i32
  }
}

</mosaic_0001>

<bundles_post_ra>
// kernel: tpu_custom_call.1
= control target key start
LH: loop header
LB: loop body
LE: loop exit
PB: predicated region body
PF: predicated region fallthrough
CT: control target
= control target key end

     0   :  { %7 = vsyncpa [#allocation3], 0  ;;  %s1875_s0 = inlined_call_operand.vmem [shape: f32[256,8], index: 0, kind: input, shape index: {}]   ;;  %s1876_s1 = inlined_call_operand.hbm [shape: f32[424,128], index: 1, kind: input, shape index: {}]   ;;  %s1877_s2 = inlined_call_operand.hbm [shape: f32[256,128], index: 2, kind: output, shape index: {}]  }
   0x1   :  { %8 = vsyncpa [#allocation4], 0 }
   0x2   :  { %10 = vsyncpa [#allocation4 + $0x1], 0  ;;  %s1663_s9 = smov 0   ;;  %s1665_s10 = smov 0  }
   0x3   :  { %s1667_s11 = smov 0   ;;  %s1669_s12 = smov 0  }
   0x4 LB: > { %s1684_s13 = sadd.s32 4294967295, %s1640_s12   ;;  %s1026_s14 = sadd.s32 4294967294, %s1640_s12   ;;  %s1640_s12 = sphi %s1669_s12, %s1885_s12   ;;  %s1636_s11 = sphi %s1667_s11, %s1884_s11   ;;  %s1632_s10 = sphi %s1665_s10, %s1883_s10   ;;  %s1628_s9 = sphi %s1663_s9, %s1882_s9  }
   0x5   : > { %s1688_s15 = sadd.s32 1, %s1640_s12   ;;  %s70_s16 = sadd.s32 1, %s1636_s11 }
   0x6   : > { %s67_s17 = ssub.s32 %s1640_s12, %s1688_s15  ;;  %p80_p0 = scmp.ne.s32.totalorder %s1636_s11, %s1632_s10 }
   0x7   : > { %p68_p1 = scmp.eq.s32.totalorder %s67_s17, 0  ;;  %p81_p2 = scmp.eq.s32.totalorder %s1684_s13, 1 }
   0x8   : > { %p86_p3 = scmp.ne.s32.totalorder %s1632_s10, %s1628_s9  ;;  %p87_p4 = scmp.eq.s32.totalorder %s1026_s14, 1 }
   0x9   : > { %s1699_s18 = scalar_select %p68_p1, %s1636_s11, %s70_s16  }
   0xa   : > { %p1701_p5 = por %p81_p2, %p80_p0  ;;  %p1705_p6 = por %p87_p4, %p86_p3 }
   0xb   : > { %p1027_p7 = scmp.ge.s32.totalorder %s1640_s12, 1  ;;  %p94_p8 = scmp.lt.s32.totalorder %s1640_s12, 3 }
   0xc   : > { %s1879_s20 = scalar_select %p1705_p6, 1, 0 }
   0xd   : > { %p1414_p9 = scmp.eq.s32.totalorder %s1684_s13, 0  ;;  %p1712_p10 = pnand %p1027_p7, %p94_p8 }
   0xe   : > { %s1642_s22 = smov [#allocation2]  }
   0xf   : > { %s106_s23 = sshll.u32 %s1642_s22, 4  ;;  %p1406_p11 = pneg %p1712_p10  ;;  %s107_s23 = int_to_ptr.vmem [resolvable:$true] %s106_s23 }
  0x10   : > { %s1561_s24 = scalar_lea.vmem %s107_s23, 6784  ;;  %p1569_p3 = scmp.lt.s32.totalorder %s107_s23, %s107_s23 }
  0x11   : > { %p1407_p12 = pnand %p1414_p9, %p1406_p11  ;;  %p1562_p0 = scmp.ne.s32.totalorder %s107_s23, %s1561_s24 }
  0x12   : > { %p1570_p4 = scmp.lt.s32.totalorder %s1561_s24, %s1561_s24 }
  0x13   : > { %p1552_p13 = pneg %p1407_p12 }
  0x14   : > { %p1571_p6 = por %p1570_p4, %p1569_p3 }
  0x15   : > { %p1564_p1 = pnand %p1562_p0, %p1552_p13 }
  0x17   : > { %p1565_p2 = pneg %p1564_p1 }
  0x19   : > { %p1572_p7 = pnand %p1571_p6, %p1565_p2 }
  0x1b   : > { %1575 = shalt.err (!%p1572_p7)
}
  0x1c   : > { %s1643_s25 = smov 128   ;;  %s1644_s26 = smov 8  }
  0x1d   : > { %1409 = dma.hbm_to_vmem [thread:$0]  (!%p1407_p12), %s1876_s1, 6784, %s107_s23, [#allocation3], %s1643_s25, %s1643_s25, %s1644_s26  }
  0x1e   : > { %131 = sbr.rel (%p1712_p10) target bundleno = 919 (0x397), region = 28 }
  0x23   : > { %1619 = dma.done.wait (%p1414_p9), [#allocation3], 6784  }
  0x24   : > { %1621 = vsyncadd (%p1414_p9), [#allocation3], 4294960512  ;;  %s1033_s29 = sshll.u32 %s1684_s13, 4  ;;  %vm182_vm0 = vcmask 64512   ;;  %v176_v0 = vld [vmem:[#allocation2] sm:$0xff]  ;;  %v407_v6 = vld [vmem:[#allocation2 + $0x88] sm:$0xff] }
  0x25   : > { %p154_p8 = scmp.lt.s32.totalorder %s1033_s29, 31  ;;  %1174 = vmatprep.subr.mxu0 %v176_v0  ;;  %1200 = vmatprep.subr.mxu1 %v407_v6  ;;  %v406_v7 = vld [vmem:[#allocation2 + $0x80] sm:$0xff]  ;;  %v405_v8 = vld [vmem:[#allocation2 + $0x78] sm:$0xff]  ;;  %v404_v11 = vld [vmem:[#allocation2 + $0x70] sm:$0xff]  ;;  %s150_s6 = sand.u32 1, %s1632_s10  }
  0x26   : > { %1175 = vmatpush3.msra.mxu0 %v176_v0  ;;  %1201 = vmatpush3.msra.mxu1 %v407_v6  ;;  %v403_v12 = vld [vmem:[#allocation2 + $0x68] sm:$0xff]  ;;  %v402_v15 = vld [vmem:[#allocation2 + $0x60] sm:$0xff]  ;;  %v401_v23 = vld [vmem:[#allocation2 + $0x58] sm:$0xff]  ;;  %s1032_s7 = sshll.u32 %s150_s6, 7  ;;  %s1060_s14 = sshll.u32 %s1684_s13, 11 }
  0x27   : > { %s1887_s29 = smov (!%p154_p8, %s1033_s29), 31  ;;  %1202 = vmatprep.subr.mxu1 %v406_v7  ;;  %v400_v24 = vld [vmem:[#allocation2 + $0x50] sm:$0xff]  ;;  %v399_v25 = vld [vmem:[#allocation2 + $0x48] sm:$0xff]  ;;  %v398_v26 = vld [vmem:[#allocation2 + $0x40] sm:$0xff]  ;;  %s1806_s8 = scalar_lea.vmem [#allocation5], %s1032_s7 }
  0x28   : > { %s1034_s30 = sshll.u32 %s1887_s29, 3  ;;  %1203 = vmatpush3.msra.mxu1 %v406_v7  ;;  %v397_v27 = vld [vmem:[#allocation2 + $0x38] sm:$0xff]  ;;  %v396_v28 = vld [vmem:[#allocation2 + $0x30] sm:$0xff]  ;;  %v395_v29 = vld [vmem:[#allocation2 + $0x28] sm:$0xff]  ;;  %s952_s16 = sshll.u32 %s1806_s8, 4  ;;  %s1829_s16 = int_to_ptr.vmem [resolvable:$true] %s952_s16 }
  0x29   : > { %s1733_s5 = scalar_lea.vmem %s1875_s0, %s1034_s30  ;;  %1204 = vmatprep.subr.mxu1 %v405_v8  ;;  %v394_v30 = vld [vmem:[#allocation2 + $0x20] sm:$0xff]  ;;  %v393_v31 = vld [vmem:[#allocation2 + $0x18] sm:$0xff]  ;;  %v392_v32 = vld [vmem:[#allocation2 + $0x10] sm:$0xff]  ;;  %s1827_s22 = scalar_lea.hbm %s1877_s2, %s1060_s14 }
  0x2a   : > { %v160_v1 = vld [vmem:[%s1733_s5] sm:$0xff]  ;;  %v161_v2 = vld [vmem:[%s1733_s5 + $0x8] sm:$0xff]  ;;  %v162_v3 = vld [vmem:[%s1733_s5 + $0x10] sm:$0xff]  ;;  %1205 = vmatpush3.msra.mxu1 %v405_v8  ;;  %s1835_s13 = scalar_lea.sflag [#allocation4], %s150_s6  ;;  %s1576_s23 = scalar_lea.vmem %s1829_s16, 2048 }
  0x2b   : > { %1176 = vmatprep.mubr.msk.f32.mxu0 %vm182_vm0, %v160_v1  ;;  %v163_v4 = vld [vmem:[%s1733_s5 + $0x18] sm:$0xff]  ;;  %v164_v5 = vld [vmem:[%s1733_s5 + $0x20] sm:$0xff]  ;;  %v165_v9 = vld [vmem:[%s1733_s5 + $0x28] sm:$0xff]  ;;  %1206 = vmatprep.subr.mxu1 %v404_v11  ;;  %p1577_p6 = scmp.ne.s32.totalorder %s1829_s16, %s1576_s23  ;;  %s1645_s24 = smov [#allocation5]  }
  0x2c   : > { %1177 = vmatmul.mubr.msk.f32.vlgmr.msra.gmra.mxu0 %vm182_vm0, %v161_v2  ;;  %v166_v10 = vld [vmem:[%s1733_s5 + $0x30] sm:$0xff]  ;;  %v167_v13 = vld [vmem:[%s1733_s5 + $0x38] sm:$0xff]  ;;  %v168_v14 = vld [vmem:[%s1733_s5 + $0x40] sm:$0xff]  ;;  %1207 = vmatpush3.msra.mxu1 %v404_v11  ;;  %s1580_s25 = sshll.u32 %s1645_s24, 4  ;;  %s1581_s25 = int_to_ptr.vmem [resolvable:$false] %s1580_s25 }
  0x2d   : > { %1179 = vmatprep.mubr.msk.f32.mxu0 %vm182_vm0, %v162_v3  ;;  %1208 = vmatprep.subr.mxu1 %v403_v12  ;;  %v169_v16 = vld [vmem:[%s1733_s5 + $0x48] sm:$0xff]  ;;  %v170_v17 = vld [vmem:[%s1733_s5 + $0x50] sm:$0xff]  ;;  %v171_v18 = vld [vmem:[%s1733_s5 + $0x58] sm:$0xff]  ;;  %p1578_p9 = pnand %p1577_p6, %p1701_p5  ;;  %s1582_s26 = scalar_lea.vmem %s1581_s25, 4096 }
  0x2e   : > { %1209 = vmatpush3.msra.mxu1 %v403_v12  ;;  %v172_v19 = vld [vmem:[%s1733_s5 + $0x60] sm:$0xff]  ;;  %v173_v20 = vld [vmem:[%s1733_s5 + $0x68] sm:$0xff]  ;;  %v174_v21 = vld [vmem:[%s1733_s5 + $0x70] sm:$0xff]  ;;  %p1583_p11 = scmp.lt.s32.totalorder %s1829_s16, %s1581_s25  ;;  %p1584_p12 = scmp.lt.s32.totalorder %s1582_s26, %s1576_s23 }
  0x2f   : > { %1210 = vmatprep.subr.mxu1 %v402_v15  ;;  %v175_v22 = vld [vmem:[%s1733_s5 + $0x78] sm:$0xff]  ;;  %v589_v33 = vld [vmem:[#allocation2 + $0x110] sm:$0xff]  ;;  %v588_v34 = vld [vmem:[#allocation2 + $0x108] sm:$0xff]  ;;  %p1579_p10 = pneg %p1578_p9 }
  0x30   : > { %1180 = vmatmul.mubr.msk.f32.gmra.mxu0 %vm182_vm0, %v163_v4  ;;  %1211 = vmatpush3.msra.mxu1 %v402_v15  ;;  %v587_v35 = vld [vmem:[#allocation2 + $0x100] sm:$0xff]  ;;  %v586_v36 = vld [vmem:[#allocation2 + $0xf8] sm:$0xff]  ;;  %v585_v37 = vld [vmem:[#allocation2 + $0xf0] sm:$0xff]  ;;  %p1585_p13 = por %p1584_p12, %p1583_p11 }
  0x31   : > { %1182 = vmatprep.mubr.msk.f32.mxu0 %vm182_vm0, %v164_v5  ;;  %1212 = vmatprep.subr.mxu1 %v401_v23  ;;  %v584_v38 = vld [vmem:[#allocation2 + $0xe8] sm:$0xff]  ;;  %v583_v39 = vld [vmem:[#allocation2 + $0xe0] sm:$0xff] }
  0x32   : > { %1213 = vmatpush3.msra.mxu1 %v401_v23  ;;  %1256 = vmatprep.subr.mxu0 %v589_v33  ;;  %v1035_v40 = vld [vmem:[#allocation2 + $0x8] ss:$0 sm:$0xff]  ;;  %p1586_p0 = pnand %p1585_p13, %p1579_p10 }
  0x33   : > { %1214 = vmatprep.subr.mxu1 %v400_v24  ;;  %1257 = vmatpush3.msra.mxu0 %v589_v33  ;;  %v574_v33 = vld [vmem:[#allocation2 + $0x98] sm:$0xff] }
  0x34   : > { %1183 = vmatmul.mubr.msk.f32.gmra.mxu0 %vm182_vm0, %v165_v9  ;;  %1215 = vmatpush3.msra.mxu1 %v400_v24 }
  0x35   : > { %1185 = vmatprep.mubr.msk.f32.mxu0 %vm182_vm0, %v166_v10  ;;  %1216 = vmatprep.subr.mxu1 %v399_v25 }
  0x36   : > { %1217 = vmatpush3.msra.mxu1 %v399_v25  ;;  %1258 = vmatprep.subr.mxu0 %v588_v34  ;;  %v582_v25 = vld [vmem:[#allocation2 + $0xd8] sm:$0xff] }
  0x37   : > { %1218 = vmatprep.subr.mxu1 %v398_v26  ;;  %1259 = vmatpush3.msra.mxu0 %v588_v34  ;;  %v771_v34 = vld [vmem:[#allocation2 + $0x198] sm:$0xff] }
  0x38   : > { %1186 = vmatmul.mubr.msk.f32.gmra.mxu0 %vm182_vm0, %v167_v13  ;;  %1219 = vmatpush3.msra.mxu1 %v398_v26  ;;  %v581_v26 = vld [vmem:[#allocation2 + $0xd0] sm:$0xff] }
  0x39   : > { %1188 = vmatprep.mubr.msk.f32.mxu0 %vm182_vm0, %v168_v14  ;;  %1220 = vmatprep.subr.mxu1 %v397_v27 }
  0x3a   : > { %1221 = vmatpush3.msra.mxu1 %v397_v27  ;;  %1260 = vmatprep.subr.mxu0 %v587_v35  ;;  %v580_v27 = vld [vmem:[#allocation2 + $0xc8] sm:$0xff] }
  0x3b   : > { %1222 = vmatprep.subr.mxu1 %v396_v28  ;;  %1261 = vmatpush3.msra.mxu0 %v587_v35  ;;  %v770_v35 = vld [vmem:[#allocation2 + $0x190] sm:$0xff] }
  0x3c   : > { %1189 = vmatmul.mubr.msk.f32.gmra.mxu0 %vm182_vm0, %v169_v16  ;;  %1223 = vmatpush3.msra.mxu1 %v396_v28  ;;  %v579_v28 = vld [vmem:[#allocation2 + $0xc0] sm:$0xff] }
  0x3d   : > { %1191 = vmatprep.mubr.msk.f32.mxu0 %vm182_vm0, %v170_v17  ;;  %1224 = vmatprep.subr.mxu1 %v395_v29 }
  0x3e   : > { %1225 = vmatpush3.msra.mxu1 %v395_v29  ;;  %1262 = vmatprep.subr.mxu0 %v586_v36  ;;  %v578_v29 = vld [vmem:[#allocation2 + $0xb8] sm:$0xff] }
  0x3f   : > { %1226 = vmatprep.subr.mxu1 %v394_v30  ;;  %1263 = vmatpush3.msra.mxu0 %v586_v36  ;;  %v769_v36 = vld [vmem:[#allocation2 + $0x188] sm:$0xff] }
  0x40   : > { %1192 = vmatmul.mubr.msk.f32.gmra.mxu0 %vm182_vm0, %v171_v18  ;;  %1227 = vmatpush3.msra.mxu1 %v394_v30  ;;  %v577_v30 = vld [vmem:[#allocation2 + $0xb0] sm:$0xff] }
  0x41   : > { %1194 = vmatprep.mubr.msk.f32.mxu0 %vm182_vm0, %v172_v19  ;;  %1228 = vmatprep.subr.mxu1 %v393_v31 }
  0x42   : > { %1229 = vmatpush3.msra.mxu1 %v393_v31  ;;  %1264 = vmatprep.subr.mxu0 %v585_v37  ;;  %v576_v31 = vld [vmem:[#allocation2 + $0xa8] sm:$0xff] }
  0x43   : > { %1230 = vmatprep.subr.mxu1 %v392_v32  ;;  %1265 = vmatpush3.msra.mxu0 %v585_v37  ;;  %v1767_v37 = vld [vmem:[#allocation2 + $0x180] sm:$0xff] }
  0x44   : > { %1195 = vmatmul.mubr.msk.f32.gmra.mxu0 %vm182_vm0, %v173_v20  ;;  %1231 = vmatpush3.msra.mxu1 %v392_v32  ;;  %v575_v32 = vld [vmem:[#allocation2 + $0xa0] sm:$0xff] }
  0x45   : > { %1197 = vmatprep.mubr.msk.f32.mxu0 %vm182_vm0, %v174_v21  ;;  %1266 = vmatprep.subr.mxu0 %v584_v38 }
  0x46   : > { %1267 = vmatpush3.msra.mxu0 %v584_v38  ;;  %1368 = vmatprep.subr.mxu1 %v771_v34  ;;  %v1770_v38 = vld [vmem:[#allocation2 + $0x178] sm:$0xff] }
  0x47   : > { %1268 = vmatprep.subr.mxu0 %v583_v39 }
  0x48   : > { %1198 = vmatmul.mubr.msk.f32.gmra.mxu0 %vm182_vm0, %v175_v22 }
  0x49   : > { %1269 = vmatpush3.msra.mxu0 %v583_v39  ;;  %v1774_v39 = vld [vmem:[#allocation2 + $0x170] sm:$0xff] }
  0x4a   : > { %1270 = vmatprep.subr.mxu0 %v582_v25 }
  0x4b   : > { %1271 = vmatpush3.msra.mxu0 %v582_v25  ;;  %v765_v25 = vld [vmem:[#allocation2 + $0x168] sm:$0xff] }
  0x4c   : > { %1272 = vmatprep.subr.mxu0 %v581_v26 }
  0x4d   : > { %1273 = vmatpush3.msra.mxu0 %v581_v26  ;;  %v764_v26 = vld [vmem:[#allocation2 + $0x160] sm:$0xff] }
  0x4e   : > { %1274 = vmatprep.subr.mxu0 %v580_v27 }
  0x4f   : > { %1275 = vmatpush3.msra.mxu0 %v580_v27  ;;  %v763_v27 = vld [vmem:[#allocation2 + $0x158] sm:$0xff] }
  0x50   : > { %1276 = vmatprep.subr.mxu0 %v579_v28 }
  0x51   : > { %1277 = vmatpush3.msra.mxu0 %v579_v28  ;;  %v762_v28 = vld [vmem:[#allocation2 + $0x150] sm:$0xff] }
  0x52   : > { %1278 = vmatprep.subr.mxu0 %v578_v29 }
  0x53   : > { %1279 = vmatpush3.msra.mxu0 %v578_v29  ;;  %v761_v29 = vld [vmem:[#allocation2 + $0x148] sm:$0xff] }
  0x54   : > { %1280 = vmatprep.subr.mxu0 %v577_v30 }
  0x55   : > { %1281 = vmatpush3.msra.mxu0 %v577_v30  ;;  %v760_v30 = vld [vmem:[#allocation2 + $0x140] sm:$0xff] }
  0x56   : > { %1282 = vmatprep.subr.mxu0 %v576_v31 }
  0x57   : > { %1283 = vmatpush3.msra.mxu0 %v576_v31  ;;  %v759_v31 = vld [vmem:[#allocation2 + $0x138] sm:$0xff] }
  0x58   : > { %1284 = vmatprep.subr.mxu0 %v575_v32 }
  0x59   : > { %1285 = vmatpush3.msra.mxu0 %v575_v32  ;;  %v758_v32 = vld [vmem:[#allocation2 + $0x130] sm:$0xff] }
  0x5a   : > { %1286 = vmatprep.subr.mxu0 %v574_v33 }
  0x5b   : > { %1287 = vmatpush3.msra.mxu0 %v574_v33  ;;  %v757_v33 = vld [vmem:[#allocation2 + $0x128] sm:$0xff] }
  0x5c   : > { %1312 = vmatprep.subr.mxu0 %v771_v34 }
  0xec   : > { %v1178_v41 = vpop.f32.mrf.mxu0 }
  0xed   : > { %v303_v42 = vadd.f32 %v1178_v41, %v1035_v40 }
  0xee   : > { %v297_v43 = vpop.f32.mrf.mxu0 }
  0xef   : > { %v298_v44 = vadd.f32 %v1035_v40, %v297_v43 }
  0xf0   : > { %v1181_v45 = vpop.f32.mrf.mxu0 }
  0xf1   : > { %1454 = vtanh.f32 %v298_v44  ;;  %v313_v46 = vadd.f32 %v1181_v45, %v1035_v40 }
  0xf2   : > { %1456 = vtanh.f32 %v303_v42  ;;  %v307_v47 = vpop.f32.mrf.mxu0 }
  0xf3   : > { %v308_v48 = vadd.f32 %v1035_v40, %v307_v47 }
  0xf4   : > { %v1184_v49 = vpop.f32.mrf.mxu0 }
  0xf5   : > { %1458 = vtanh.f32 %v308_v48  ;;  %v323_v50 = vadd.f32 %v1184_v49, %v1035_v40 }
  0xf6   : > { %1460 = vtanh.f32 %v313_v46  ;;  %v317_v51 = vpop.f32.mrf.mxu0 }
  0xf7   : > { %v318_v52 = vadd.f32 %v1035_v40, %v317_v51 }
  0xf8   : > { %v1187_v53 = vpop.f32.mrf.mxu0 }
  0xf9   : > { %1462 = vtanh.f32 %v318_v52  ;;  %v333_v54 = vadd.f32 %v1187_v53, %v1035_v40 }
  0xfa   : > { %1464 = vtanh.f32 %v323_v50  ;;  %v327_v55 = vpop.f32.mrf.mxu0 }
  0xfb   : > { %v328_v56 = vadd.f32 %v1035_v40, %v327_v55 }
  0xfc   : > { %v1190_v57 = vpop.f32.mrf.mxu0 }
  0xfd   : > { %1466 = vtanh.f32 %v328_v56  ;;  %v343_v59 = vadd.f32 %v1190_v57, %v1035_v40 }
  0xfe   : > { %v1455_v58 = vpop.eup %1454  ;;  %1468 = vtanh.f32 %v333_v54  ;;  %v337_v60 = vpop.f32.mrf.mxu0 }
  0xff   : > { %v1457_v61 = vpop.eup %1456  ;;  %v338_v62 = vadd.f32 %v1035_v40, %v337_v60  ;;  %1232 = vmatprep.mubr.f32.mxu1 %v1455_v58 }
 0x100   : > { %v1193_v63 = vpop.f32.mrf.mxu0  ;;  %1233 = vmatmul.mubr.f32.vlgmr.msra.gmra.mxu1 %v1457_v61 }
 0x101   : > { %1470 = vtanh.f32 %v338_v62  ;;  %v353_v1 = vadd.f32 %v1193_v63, %v1035_v40  ;;  %1384 = vmatpush3.msra.mxu1 %v771_v34 }
 0x102   : > { %v1459_v0 = vpop.eup %1458  ;;  %1472 = vtanh.f32 %v343_v59  ;;  %v347_v2 = vpop.f32.mrf.mxu0  ;;  %1369 = vmatprep.subr.mxu1 %v770_v35 }
 0x103   : > { %v1461_v3 = vpop.eup %1460  ;;  %v348_v4 = vadd.f32 %v1035_v40, %v347_v2  ;;  %1235 = vmatprep.mubr.f32.mxu1 %v1459_v0  ;;  %1385 = vmatpush3.msra.mxu1 %v770_v35 }
 0x104   : > { %v1196_v5 = vpop.f32.mrf.mxu0  ;;  %1236 = vmatmul.mubr.f32.gmra.mxu1 %v1461_v3  ;;  %1370 = vmatprep.subr.mxu1 %v769_v36 }
 0x105   : > { %1474 = vtanh.f32 %v348_v4  ;;  %v363_v7 = vadd.f32 %v1196_v5, %v1035_v40  ;;  %1386 = vmatpush3.msra.mxu1 %v769_v36 }
 0x106   : > { %v1463_v6 = vpop.eup %1462  ;;  %1476 = vtanh.f32 %v353_v1  ;;  %v357_v8 = vpop.f32.mrf.mxu0  ;;  %1371 = vmatprep.subr.mxu1 %v1767_v37 }
 0x107   : > { %v1465_v9 = vpop.eup %1464  ;;  %v358_v10 = vadd.f32 %v1035_v40, %v357_v8  ;;  %1238 = vmatprep.mubr.f32.mxu1 %v1463_v6  ;;  %1387 = vmatpush3.msra.mxu1 %v1767_v37 }
 0x108   : > { %v1199_v11 = vpop.f32.mrf.mxu0  ;;  %1239 = vmatmul.mubr.f32.gmra.mxu1 %v1465_v9  ;;  %1372 = vmatprep.subr.mxu1 %v1770_v38 }
 0x109   : > { %1478 = vtanh.f32 %v358_v10  ;;  %v373_v13 = vadd.f32 %v1199_v11, %v1035_v40  ;;  %1388 = vmatpush3.msra.mxu1 %v1770_v38 }
 0x10a   : > { %v1467_v12 = vpop.eup %1466  ;;  %1480 = vtanh.f32 %v363_v7  ;;  %v367_v14 = vpop.f32.mrf.mxu0  ;;  %1373 = vmatprep.subr.mxu1 %v1774_v39 }
 0x10b   : > { %v1469_v15 = vpop.eup %1468  ;;  %v368_v16 = vadd.f32 %v1035_v40, %v367_v14  ;;  %1241 = vmatprep.mubr.f32.mxu1 %v1467_v12  ;;  %1389 = vmatpush3.msra.mxu1 %v1774_v39  ;;  %v1779_v40 = vld [vmem:[#allocation2 + $0x90] ss:$0 sm:$0xff] }
 0x10c   : > { %1242 = vmatmul.mubr.f32.gmra.mxu1 %v1469_v15  ;;  %1374 = vmatprep.subr.mxu1 %v765_v25 }
 0x10d   : > { %1482 = vtanh.f32 %v368_v16  ;;  %1390 = vmatpush3.msra.mxu1 %v765_v25 }
 0x10e   : > { %v1471_v17 = vpop.eup %1470  ;;  %1484 = vtanh.f32 %v373_v13  ;;  %1375 = vmatprep.subr.mxu1 %v764_v26 }
 0x10f   : > { %v1473_v18 = vpop.eup %1472  ;;  %1244 = vmatprep.mubr.f32.mxu1 %v1471_v17  ;;  %1391 = vmatpush3.msra.mxu1 %v764_v26 }
 0x110   : > { %1245 = vmatmul.mubr.f32.gmra.mxu1 %v1473_v18  ;;  %1376 = vmatprep.subr.mxu1 %v763_v27 }
 0x111   : > { %1392 = vmatpush3.msra.mxu1 %v763_v27 }
 0x112   : > { %v1475_v19 = vpop.eup %1474  ;;  %1377 = vmatprep.subr.mxu1 %v762_v28 }
 0x113   : > { %v1477_v20 = vpop.eup %1476  ;;  %1247 = vmatprep.mubr.f32.mxu1 %v1475_v19  ;;  %1393 = vmatpush3.msra.mxu1 %v762_v28 }
 0x114   : > { %1248 = vmatmul.mubr.f32.gmra.mxu1 %v1477_v20  ;;  %1378 = vmatprep.subr.mxu1 %v761_v29 }
 0x115   : > { %1394 = vmatpush3.msra.mxu1 %v761_v29 }
 0x116   : > { %v1479_v21 = vpop.eup %1478  ;;  %1379 = vmatprep.subr.mxu1 %v760_v30 }
 0x117   : > { %v1481_v22 = vpop.eup %1480  ;;  %1250 = vmatprep.mubr.f32.mxu1 %v1479_v21  ;;  %1395 = vmatpush3.msra.mxu1 %v760_v30 }
 0x118   : > { %1251 = vmatmul.mubr.f32.gmra.mxu1 %v1481_v22  ;;  %1380 = vmatprep.subr.mxu1 %v759_v31 }
 0x119   : > { %1396 = vmatpush3.msra.mxu1 %v759_v31 }
 0x11a   : > { %v1483_v23 = vpop.eup %1482  ;;  %1381 = vmatprep.subr.mxu1 %v758_v32 }
 0x11b   : > { %v1485_v24 = vpop.eup %1484  ;;  %1253 = vmatprep.mubr.f32.mxu1 %v1483_v23  ;;  %1397 = vmatpush3.msra.mxu1 %v758_v32 }
 0x11c   : > { %1254 = vmatmul.mubr.f32.gmra.mxu1 %v1485_v24  ;;  %1382 = vmatprep.subr.mxu1 %v757_v33 }
 0x11d   : > { %1398 = vmatpush3.msra.mxu1 %v757_v33 }
 0x1c0   : > { %v1234_v41 = vpop.f32.mrf.mxu1 }
 0x1c1   : > { %v485_v42 = vadd.f32 %v1234_v41, %v1779_v40 }
 0x1c2   : > { %v479_v43 = vpop.f32.mrf.mxu1 }
 0x1c3   : > { %v480_v44 = vadd.f32 %v1779_v40, %v479_v43 }
 0x1c4   : > { %v1237_v45 = vpop.f32.mrf.mxu1 }
 0x1c5   : > { %1486 = vtanh.f32 %v480_v44  ;;  %v495_v46 = vadd.f32 %v1237_v45, %v1779_v40 }
 0x1c6   : > { %1488 = vtanh.f32 %v485_v42  ;;  %v489_v47 = vpop.f32.mrf.mxu1 }
 0x1c7   : > { %v490_v48 = vadd.f32 %v1779_v40, %v489_v47 }
 0x1c8   : > { %v1240_v49 = vpop.f32.mrf.mxu1 }
 0x1c9   : > { %1490 = vtanh.f32 %v490_v48  ;;  %v505_v50 = vadd.f32 %v1240_v49, %v1779_v40 }
 0x1ca   : > { %1492 = vtanh.f32 %v495_v46  ;;  %v499_v51 = vpop.f32.mrf.mxu1 }
 0x1cb   : > { %v500_v52 = vadd.f32 %v1779_v40, %v499_v51 }
 0x1cc   : > { %v1243_v53 = vpop.f32.mrf.mxu1 }
 0x1cd   : > { %1494 = vtanh.f32 %v500_v52  ;;  %v515_v54 = vadd.f32 %v1243_v53, %v1779_v40 }
 0x1ce   : > { %1496 = vtanh.f32 %v505_v50  ;;  %v509_v55 = vpop.f32.mrf.mxu1 }
 0x1cf   : > { %v510_v56 = vadd.f32 %v1779_v40, %v509_v55 }
 0x1d0   : > { %v1246_v57 = vpop.f32.mrf.mxu1 }
 0x1d1   : > { %1498 = vtanh.f32 %v510_v56  ;;  %v525_v59 = vadd.f32 %v1246_v57, %v1779_v40 }
 0x1d2   : > { %v1487_v58 = vpop.eup %1486  ;;  %1500 = vtanh.f32 %v515_v54  ;;  %v519_v60 = vpop.f32.mrf.mxu1 }
 0x1d3   : > { %v1489_v61 = vpop.eup %1488  ;;  %v520_v62 = vadd.f32 %v1779_v40, %v519_v60  ;;  %1288 = vmatprep.mubr.f32.mxu0 %v1487_v58 }
 0x1d4   : > { %v1249_v63 = vpop.f32.mrf.mxu1  ;;  %1289 = vmatmul.mubr.f32.vlgmr.msra.gmra.mxu0 %v1489_v61 }
 0x1d5   : > { %1502 = vtanh.f32 %v520_v62  ;;  %1313 = vmatpush3.msra.mxu0 %v771_v34  ;;  %v535_v1 = vadd.f32 %v1249_v63, %v1779_v40  ;;  %v756_v34 = vld [vmem:[#allocation2 + $0x120] sm:$0xff] }
 0x1d6   : > { %v1491_v0 = vpop.eup %1490  ;;  %1504 = vtanh.f32 %v525_v59  ;;  %v529_v2 = vpop.f32.mrf.mxu1  ;;  %1314 = vmatprep.subr.mxu0 %v770_v35  ;;  %1383 = vmatprep.subr.mxu1 %v756_v34 }
 0x1d7   : > { %v1493_v3 = vpop.eup %1492  ;;  %v530_v4 = vadd.f32 %v1779_v40, %v529_v2  ;;  %1291 = vmatprep.mubr.f32.mxu0 %v1491_v0  ;;  %1315 = vmatpush3.msra.mxu0 %v770_v35  ;;  %v1053_v35 = vld [vmem:[#allocation2 + $0x118] ss:$0 sm:$0xff] }
 0x1d8   : > { %v1252_v5 = vpop.f32.mrf.mxu1  ;;  %1292 = vmatmul.mubr.f32.gmra.mxu0 %v1493_v3  ;;  %1316 = vmatprep.subr.mxu0 %v769_v36 }
 0x1d9   : > { %1506 = vtanh.f32 %v530_v4  ;;  %1317 = vmatpush3.msra.mxu0 %v769_v36  ;;  %v545_v7 = vadd.f32 %v1252_v5, %v1779_v40  ;;  %1399 = vmatpush3.msra.mxu1 %v756_v34 }
 0x1da   : > { %v1495_v6 = vpop.eup %1494  ;;  %1508 = vtanh.f32 %v535_v1  ;;  %v539_v8 = vpop.f32.mrf.mxu1  ;;  %1318 = vmatprep.subr.mxu0 %v1767_v37 }
 0x1db   : > { %v1497_v9 = vpop.eup %1496  ;;  %v540_v10 = vadd.f32 %v1779_v40, %v539_v8  ;;  %1294 = vmatprep.mubr.f32.mxu0 %v1495_v6  ;;  %1319 = vmatpush3.msra.mxu0 %v1767_v37 }
 0x1dc   : > { %v1255_v11 = vpop.f32.mrf.mxu1  ;;  %1295 = vmatmul.mubr.f32.gmra.mxu0 %v1497_v9  ;;  %1320 = vmatprep.subr.mxu0 %v1770_v38 }
 0x1dd   : > { %1510 = vtanh.f32 %v540_v10  ;;  %1321 = vmatpush3.msra.mxu0 %v1770_v38  ;;  %v555_v13 = vadd.f32 %v1255_v11, %v1779_v40 }
 0x1de   : > { %v1499_v12 = vpop.eup %1498  ;;  %1512 = vtanh.f32 %v545_v7  ;;  %v549_v14 = vpop.f32.mrf.mxu1  ;;  %1322 = vmatprep.subr.mxu0 %v1774_v39 }
 0x1df   : > { %v1501_v15 = vpop.eup %1500  ;;  %v550_v16 = vadd.f32 %v1779_v40, %v549_v14  ;;  %1297 = vmatprep.mubr.f32.mxu0 %v1499_v12  ;;  %1323 = vmatpush3.msra.mxu0 %v1774_v39 }
 0x1e0   : > { %1298 = vmatmul.mubr.f32.gmra.mxu0 %v1501_v15  ;;  %1324 = vmatprep.subr.mxu0 %v765_v25 }
 0x1e1   : > { %1514 = vtanh.f32 %v550_v16  ;;  %1325 = vmatpush3.msra.mxu0 %v765_v25 }
 0x1e2   : > { %v1503_v17 = vpop.eup %1502  ;;  %1516 = vtanh.f32 %v555_v13  ;;  %1326 = vmatprep.subr.mxu0 %v764_v26 }
 0x1e3   : > { %v1505_v18 = vpop.eup %1504  ;;  %1300 = vmatprep.mubr.f32.mxu0 %v1503_v17  ;;  %1327 = vmatpush3.msra.mxu0 %v764_v26 }
 0x1e4   : > { %1301 = vmatmul.mubr.f32.gmra.mxu0 %v1505_v18  ;;  %1328 = vmatprep.subr.mxu0 %v763_v27 }
 0x1e5   : > { %1329 = vmatpush3.msra.mxu0 %v763_v27 }
 0x1e6   : > { %v1507_v19 = vpop.eup %1506  ;;  %1330 = vmatprep.subr.mxu0 %v762_v28 }
 0x1e7   : > { %v1509_v20 = vpop.eup %1508  ;;  %1303 = vmatprep.mubr.f32.mxu0 %v1507_v19  ;;  %1331 = vmatpush3.msra.mxu0 %v762_v28 }
 0x1e8   : > { %1304 = vmatmul.mubr.f32.gmra.mxu0 %v1509_v20  ;;  %1332 = vmatprep.subr.mxu0 %v761_v29  ;;  %v1054_v20 = vld [vmem:[#allocation2 + $0x1a0] ss:$0 sm:$0xff] }
 0x1e9   : > { %1333 = vmatpush3.msra.mxu0 %v761_v29 }
 0x1ea   : > { %v1511_v21 = vpop.eup %1510  ;;  %1334 = vmatprep.subr.mxu0 %v760_v30 }
 0x1eb   : > { %v1513_v22 = vpop.eup %1512  ;;  %1306 = vmatprep.mubr.f32.mxu0 %v1511_v21  ;;  %1335 = vmatpush3.msra.mxu0 %v760_v30 }
 0x1ec   : > { %1307 = vmatmul.mubr.f32.gmra.mxu0 %v1513_v22  ;;  %1336 = vmatprep.subr.mxu0 %v759_v31 }
 0x1ed   : > { %1337 = vmatpush3.msra.mxu0 %v759_v31 }
 0x1ee   : > { %v1515_v23 = vpop.eup %1514  ;;  %1338 = vmatprep.subr.mxu0 %v758_v32 }
 0x1ef   : > { %v1517_v24 = vpop.eup %1516  ;;  %1309 = vmatprep.mubr.f32.mxu0 %v1515_v23  ;;  %1339 = vmatpush3.msra.mxu0 %v758_v32 }
 0x1f0   : > { %1310 = vmatmul.mubr.f32.gmra.mxu0 %v1517_v24  ;;  %1340 = vmatprep.subr.mxu0 %v757_v33 }
 0x1f1   : > { %1341 = vmatpush3.msra.mxu0 %v757_v33 }
 0x1f2   : > { %1342 = vmatprep.subr.mxu0 %v756_v34 }
 0x1f3   : > { %1343 = vmatpush3.msra.mxu0 %v756_v34 }
 0x294   : > { %v1290_v36 = vpop.f32.mrf.mxu0 }
 0x295   : > { %v667_v37 = vadd.f32 %v1290_v36, %v1053_v35 }
 0x296   : > { %v661_v38 = vpop.f32.mrf.mxu0 }
 0x297   : > { %v662_v39 = vadd.f32 %v1053_v35, %v661_v38 }
 0x298   : > { %v1293_v40 = vpop.f32.mrf.mxu0 }
 0x299   : > { %1518 = vtanh.f32 %v662_v39  ;;  %v677_v41 = vadd.f32 %v1293_v40, %v1053_v35 }
 0x29a   : > { %1520 = vtanh.f32 %v667_v37  ;;  %v671_v42 = vpop.f32.mrf.mxu0 }
 0x29b   : > { %v672_v43 = vadd.f32 %v1053_v35, %v671_v42 }
 0x29c   : > { %v1296_v44 = vpop.f32.mrf.mxu0 }
 0x29d   : > { %1522 = vtanh.f32 %v672_v43  ;;  %v687_v45 = vadd.f32 %v1296_v44, %v1053_v35 }
 0x29e   : > { %1524 = vtanh.f32 %v677_v41  ;;  %v681_v46 = vpop.f32.mrf.mxu0 }
 0x29f   : > { %v682_v47 = vadd.f32 %v1053_v35, %v681_v46 }
 0x2a0   : > { %v1299_v48 = vpop.f32.mrf.mxu0 }
 0x2a1   : > { %1526 = vtanh.f32 %v682_v47  ;;  %v697_v49 = vadd.f32 %v1299_v48, %v1053_v35 }
 0x2a2   : > { %1528 = vtanh.f32 %v687_v45  ;;  %v691_v50 = vpop.f32.mrf.mxu0 }
 0x2a3   : > { %v692_v51 = vadd.f32 %v1053_v35, %v691_v50 }
 0x2a4   : > { %v1302_v52 = vpop.f32.mrf.mxu0 }
 0x2a5   : > { %1530 = vtanh.f32 %v692_v51  ;;  %v707_v54 = vadd.f32 %v1302_v52, %v1053_v35 }
 0x2a6   : > { %v1519_v53 = vpop.eup %1518  ;;  %1532 = vtanh.f32 %v697_v49  ;;  %v701_v55 = vpop.f32.mrf.mxu0 }
 0x2a7   : > { %v1521_v56 = vpop.eup %1520  ;;  %v702_v57 = vadd.f32 %v1053_v35, %v701_v55  ;;  %1344 = vmatprep.mubr.f32.mxu0 %v1519_v53 }
 0x2a8   : > { %v1305_v58 = vpop.f32.mrf.mxu0  ;;  %1345 = vmatmul.mubr.f32.vlgmr.msra.gmra.mxu0 %v1521_v56 }
 0x2a9   : > { %1534 = vtanh.f32 %v702_v57  ;;  %v717_v60 = vadd.f32 %v1305_v58, %v1053_v35 }
 0x2aa   : > { %v1523_v59 = vpop.eup %1522  ;;  %1536 = vtanh.f32 %v707_v54  ;;  %v711_v61 = vpop.f32.mrf.mxu0 }
 0x2ab   : > { %v1525_v62 = vpop.eup %1524  ;;  %v712_v63 = vadd.f32 %v1053_v35, %v711_v61  ;;  %1347 = vmatprep.mubr.f32.mxu0 %v1523_v59 }
 0x2ac   : > { %v1308_v0 = vpop.f32.mrf.mxu0  ;;  %1348 = vmatmul.mubr.f32.gmra.mxu0 %v1525_v62 }
 0x2ad   : > { %1538 = vtanh.f32 %v712_v63  ;;  %v727_v2 = vadd.f32 %v1308_v0, %v1053_v35 }
 0x2ae   : > { %v1527_v1 = vpop.eup %1526  ;;  %1540 = vtanh.f32 %v717_v60  ;;  %v721_v3 = vpop.f32.mrf.mxu0 }
 0x2af   : > { %v1529_v4 = vpop.eup %1528  ;;  %v722_v5 = vadd.f32 %v1053_v35, %v721_v3  ;;  %1350 = vmatprep.mubr.f32.mxu0 %v1527_v1 }
 0x2b0   : > { %v1311_v6 = vpop.f32.mrf.mxu0  ;;  %1351 = vmatmul.mubr.f32.gmra.mxu0 %v1529_v4 }
 0x2b1   : > { %1542 = vtanh.f32 %v722_v5  ;;  %v737_v8 = vadd.f32 %v1311_v6, %v1053_v35 }
 0x2b2   : > { %v1531_v7 = vpop.eup %1530  ;;  %1544 = vtanh.f32 %v727_v2  ;;  %v731_v9 = vpop.f32.mrf.mxu0 }
 0x2b3   : > { %v1533_v10 = vpop.eup %1532  ;;  %v732_v11 = vadd.f32 %v1053_v35, %v731_v9  ;;  %1353 = vmatprep.mubr.f32.mxu1 %v1531_v7 }
 0x2b4   : > { %1354 = vmatmul.mubr.f32.vlgmr.msra.gmra.mxu1 %v1533_v10 }
 0x2b5   : > { %1546 = vtanh.f32 %v732_v11 }
 0x2b6   : > { %v1535_v12 = vpop.eup %1534  ;;  %1548 = vtanh.f32 %v737_v8 }
 0x2b7   : > { %v1537_v13 = vpop.eup %1536  ;;  %1356 = vmatprep.mubr.f32.mxu1 %v1535_v12 }
 0x2b8   : > { %1357 = vmatmul.mubr.f32.gmra.mxu1 %v1537_v13 }
 0x2ba   : > { %v1539_v14 = vpop.eup %1538 }
 0x2bb   : > { %v1541_v15 = vpop.eup %1540  ;;  %1359 = vmatprep.mubr.f32.mxu1 %v1539_v14 }
 0x2bc   : > { %1360 = vmatmul.mubr.f32.gmra.mxu1 %v1541_v15 }
 0x2be   : > { %v1543_v16 = vpop.eup %1542 }
 0x2bf   : > { %v1545_v17 = vpop.eup %1544  ;;  %1362 = vmatprep.mubr.f32.mxu1 %v1543_v16 }
 0x2c0   : > { %1363 = vmatmul.mubr.f32.gmra.mxu1 %v1545_v17 }
 0x2c2   : > { %v1547_v18 = vpop.eup %1546 }
 0x2c3   : > { %v1549_v19 = vpop.eup %1548  ;;  %1365 = vmatprep.mubr.f32.mxu1 %v1547_v18 }
 0x2c4   : > { %1366 = vmatmul.mubr.f32.gmra.mxu1 %v1549_v19 }
 0x368   : > { %v1346_v21 = vpop.f32.mrf.mxu0 }
 0x369   : > { %v849_v22 = vadd.f32 %v1346_v21, %v1054_v20 }
 0x36a   : > { %v843_v23 = vpop.f32.mrf.mxu0 }
 0x36b   : > { %923 = vst [vmem:[%s1806_s8 + $0x8] sm:$0xff] %v849_v22  ;;  %v844_v24 = vadd.f32 %v1054_v20, %v843_v23 }
 0x36c   : > { %v1349_v25 = vpop.f32.mrf.mxu0 }
 0x36d   : > { %922 = vst [vmem:[%s1806_s8] sm:$0xff] %v844_v24  ;;  %v859_v26 = vadd.f32 %v1349_v25, %v1054_v20 }
 0x36e   : > { %v853_v27 = vpop.f32.mrf.mxu0 }
 0x36f   : > { %925 = vst [vmem:[%s1806_s8 + $0x18] sm:$0xff] %v859_v26  ;;  %v854_v28 = vadd.f32 %v1054_v20, %v853_v27 }
 0x370   : > { %v1352_v29 = vpop.f32.mrf.mxu0 }
 0x371   : > { %924 = vst [vmem:[%s1806_s8 + $0x10] sm:$0xff] %v854_v28  ;;  %v869_v30 = vadd.f32 %v1352_v29, %v1054_v20 }
 0x372   : > { %v863_v31 = vpop.f32.mrf.mxu0 }
 0x373   : > { %927 = vst [vmem:[%s1806_s8 + $0x28] sm:$0xff] %v869_v30  ;;  %v864_v32 = vadd.f32 %v1054_v20, %v863_v31 }
 0x374   : > { %v1355_v33 = vpop.f32.mrf.mxu1 }
 0x375   : > { %926 = vst [vmem:[%s1806_s8 + $0x20] sm:$0xff] %v864_v32  ;;  %v879_v34 = vadd.f32 %v1355_v33, %v1054_v20 }
 0x376   : > { %v873_v35 = vpop.f32.mrf.mxu1 }
 0x377   : > { %929 = vst [vmem:[%s1806_s8 + $0x38] sm:$0xff] %v879_v34  ;;  %v874_v36 = vadd.f32 %v1054_v20, %v873_v35 }
 0x378   : > { %v1358_v37 = vpop.f32.mrf.mxu1 }
 0x379   : > { %928 = vst [vmem:[%s1806_s8 + $0x30] sm:$0xff] %v874_v36  ;;  %v889_v38 = vadd.f32 %v1358_v37, %v1054_v20 }
 0x37a   : > { %v883_v39 = vpop.f32.mrf.mxu1 }
 0x37b   : > { %931 = vst [vmem:[%s1806_s8 + $0x48] sm:$0xff] %v889_v38  ;;  %v884_v40 = vadd.f32 %v1054_v20, %v883_v39 }
 0x37c   : > { %v1361_v41 = vpop.f32.mrf.mxu1 }
 0x37d   : > { %930 = vst [vmem:[%s1806_s8 + $0x40] sm:$0xff] %v884_v40  ;;  %v899_v42 = vadd.f32 %v1361_v41, %v1054_v20 }
 0x37e   : > { %v893_v43 = vpop.f32.mrf.mxu1 }
 0x37f   : > { %933 = vst [vmem:[%s1806_s8 + $0x58] sm:$0xff] %v899_v42  ;;  %v894_v44 = vadd.f32 %v1054_v20, %v893_v43 }
 0x380   : > { %v1364_v45 = vpop.f32.mrf.mxu1 }
 0x381   : > { %932 = vst [vmem:[%s1806_s8 + $0x50] sm:$0xff] %v894_v44  ;;  %v909_v46 = vadd.f32 %v1364_v45, %v1054_v20 }
 0x382   : > { %v903_v47 = vpop.f32.mrf.mxu1 }
 0x383   : > { %935 = vst [vmem:[%s1806_s8 + $0x68] sm:$0xff] %v909_v46  ;;  %v904_v48 = vadd.f32 %v1054_v20, %v903_v47 }
 0x384   : > { %v1367_v49 = vpop.f32.mrf.mxu1 }
 0x385   : > { %934 = vst [vmem:[%s1806_s8 + $0x60] sm:$0xff] %v904_v48  ;;  %v919_v50 = vadd.f32 %v1367_v49, %v1054_v20 }
 0x386   : > { %v913_v51 = vpop.f32.mrf.mxu1 }
 0x387   : > { %937 = vst [vmem:[%s1806_s8 + $0x78] sm:$0xff] %v919_v50  ;;  %v914_v52 = vadd.f32 %v1054_v20, %v913_v51 }
 0x389   : > { %936 = vst [vmem:[%s1806_s8 + $0x70] sm:$0xff] %v914_v52 }
 0x38a   : > { %1589 = shalt.err (!%p1586_p0)
}
 0x38b   : > { %s1590_s27 = scalar_lea.hbm %s1827_s22, 2048  ;;  %s1594_s30 = scalar_lea.hbm %s1877_s2, 4096 }
 0x38c   : > { %p1591_p1 = scmp.ne.s32.totalorder %s1827_s22, %s1590_s27  ;;  %p1595_p4 = scmp.lt.s32.totalorder %s1827_s22, %s1877_s2 }
 0x38d   : > { %p1596_p7 = scmp.lt.s32.totalorder %s1594_s30, %s1590_s27 }
 0x38e   : > { %p1592_p2 = pnand %p1591_p1, %p1701_p5 }
 0x38f   : > { %p1597_p8 = por %p1596_p7, %p1595_p4 }
 0x390   : > { %p1593_p3 = pneg %p1592_p2 }
 0x392   : > { %p1598_p6 = pnand %p1597_p8, %p1593_p3 }
 0x394   : > { %1601 = shalt.err (!%p1598_p6)
}
 0x395   : > { %s1646_s5 = smov 128   ;;  %s1647_s6 = smov 8  }
 0x396   : > { %1404 = dma.vmem_to_hbm [thread:$0]  (%p1701_p5), %s1829_s16, 2048, %s1827_s22, %s1835_s13, %s1646_s5, %s1646_s5, %s1647_s6  }
 0x397 PF: > { %p1416_p9 = scmp.ge.s32.totalorder %s1640_s12, 2  ;;  %s967_s7 = sand.u32 1, %s1628_s9  }
 0x398   : > { %p1881_p10 = scmp.ne.s32.totalorder %s1879_s20, 0  ;;  %s968_s8 = scalar_lea.sflag [#allocation4], %s967_s7 }
 0x39a   : > { %p1411_p11 = pnand %p1416_p9, %p1881_p10 }
 0x39c   : > { %p1412_p12 = pneg %p1411_p11 }
 0x39e   : > { %1623 = dma.done.wait (%p1412_p12), %s968_s8, 2048  }
 0x39f   : > { %1625 = vsyncadd (%p1412_p12), %s968_s8, 4294965248  ;;  %p13_p13 = scmp.ge.s32.totalorder %s1688_s15, 4   ;;  %s1882_s9 = smov %s1632_s10 }
 0x3a0   : > { %s1883_s10 = smov %s1636_s11  ;;  %s1884_s11 = smov %s1699_s18 }
 0x3a1   : > { %s1885_s12 = smov %s1688_s15  ;;  %15 = sbr.rel (!%p13_p13) target bundleno = 4 (0x4), region = 68 }
 0x3a6   :  { %973 = vsyncpa [#allocation3], 1 }
 0x3a7   :  { %975 = vsyncpa [#allocation3 + $0x1], 1 }
 0x3a8   :  { %976 = vsyncpa [#allocation4], 1 }
 0x3a9   :  { %978 = vsyncpa [#allocation4 + $0x1], 1 }

</bundles_post_ra>
